<compile_context>
chip_gen: v6e
topology: v6e:2x2x1
jax: 0.10.0
libtpu: 0.0.40
codegen_flags: <defaults>
</compile_context>

<pallas_src>
import functools

import jax
import jax.numpy as jnp
from jax import lax
from jax.scipy.linalg import solve_triangular
from jax.experimental import pallas as pl
from jax.experimental.pallas import tpu as pltpu


def _cdiv(a, b):
    return -(-a // b)


def _vmem_budget_bytes():
    """Generation-aware scoped-VMEM budget (leaves headroom below physical VMEM)."""
    try:
        cap = int(pltpu.get_tpu_info().vmem_capacity_bytes)
    except Exception:
        cap = 64 * 1024 * 1024          # conservative fallback (matches v7x physical)
    # v7x (64 MiB phys) -> 48 MiB; v5e/v6e (128 MiB phys) -> 96 MiB.
    return max(32 * 1024 * 1024, min((cap * 3) // 4, 96 * 1024 * 1024))


# --------------------------------------------------------------------------- #
# Pallas kernel: streaming per-class statistics                                #
# --------------------------------------------------------------------------- #
def _lda_stats_kernel(lane_cls_ref, feat_ref, lbl_ref,
                      counts_ref, sums_ref, m2_ref, *,
                      m2_cls_major, use_bf16_matmul):
    i = pl.program_id(1)                 # inner reduction step over N
    tn, d = feat_ref.shape               # tile rows, feature dim
    c = counts_ref.shape[-1]             # num classes

    @pl.when(i == 0)
    def _init():
        counts_ref[...] = jnp.zeros_like(counts_ref)
        sums_ref[...] = jnp.zeros_like(sums_ref)
        m2_ref[...] = jnp.zeros_like(m2_ref)

    x = feat_ref[...]                     # [TN, D]; padded rows are exact zeros
    if use_bf16_matmul:
        x = x.astype(jnp.bfloat16)
    cdt = x.dtype
    lbl = lbl_ref[...]                    # [TN, 1] int32; padded rows are -1

    # One-hot from labels (sentinel -1 rows are all-zero).
    class_iota = lax.broadcasted_iota(jnp.int32, (tn, c), 1)
    one_hot = class_iota == lbl                                        # [TN, C] bool

    # Per-class counts (f32 accumulation) and per-class feature sums (MXU).
    counts_ref[...] += jnp.sum(one_hot.astype(jnp.float32), axis=0, keepdims=True)[None]
    # TODO(synk): if profiling shows the XLU binding, fold counts into an MXU dot.
    sums_ref[...] += lax.dot_general(one_hot.astype(cdt), x, (((0,), (0,)), ((), ())),
                                     preferred_element_type=jnp.float32)[None]

    # Per-class second moments fused into one lane-dense MXU matmul.
    # `sel` is a single compare against the precomputed lane->class map, and
    # `big` is one fused select (no bool->astype->multiply chain, no row masking).
    sel = lane_cls_ref[...] == lbl                                     # [TN, C*D] bool
    big = jnp.where(sel, jnp.concatenate([x] * c, axis=1), jnp.zeros((), cdt))
    if m2_cls_major:
        # [C*D, D]: epilogue reshape to [C, D, D] is free (no transpose).
        m2_ref[...] += lax.dot_general(big, x, (((0,), (0,)), ((), ())),
                                       preferred_element_type=jnp.float32)[None]
    else:
        # [D, C*D]: lane-dense stores for small D.
        m2_ref[...] += lax.dot_general(x, big, (((0,), (0,)), ((), ())),
                                       preferred_element_type=jnp.float32)[None]


def _lda_stats_pallas(features, labels, num_classes, tile_n=None,
                      num_core_splits=2, use_bf16_matmul=False):
    """Returns (counts [C], sums [C, D], m2 [C, D, D]) computed by the Pallas kernel."""
    n, d = features.shape
    c = int(num_classes)
    itemsize = features.dtype.itemsize
    sub_mult = max(8, 32 // max(1, itemsize))       # 8 f32 / 16 bf16 / 32 int8 rows
    budget = _vmem_budget_bytes()

    if tile_n is None:
        # Size from the *full* per-step working set: resident f32 accumulators
        # (counts/sums/m2, x2 buffering slack), double-buffered feature/label tiles,
        # and the materialized [TN, C*D] `big` operand + mask temporaries.
        acc_bytes = 2 * 4 * (c * d * d + c * d + c)
        per_row = (2 * d * itemsize            # features, double-buffered
                   + 2 * 128 * 4               # int32 label tile (lane-padded), x2
                   + 3 * c * d * 4)            # big + sel/temporaries (conservative)
        avail = budget - acc_bytes - 6 * 1024 * 1024
        tile_n = max(sub_mult, avail // per_row)
    tile_n = int(tile_n)
    tile_n = max(sub_mult, (tile_n // sub_mult) * sub_mult)
    n_rounded = _cdiv(n, sub_mult) * sub_mult
    tile_n = min(tile_n, n_rounded)

    total_tiles = _cdiv(n, tile_n)
    splits = max(1, min(int(num_core_splits), total_tiles))
    per_split_tiles = _cdiv(total_tiles, splits)
    padded_n = splits * per_split_tiles * tile_n

    labels2d = labels.astype(jnp.int32).reshape(n, 1)
    if padded_n != n:
        pad = padded_n - n
        # Padded rows: features = 0, labels = -1 (sentinel outside [0, C)), so they
        # contribute exactly nothing to counts / sums / m2 (no in-kernel masking).
        features = jnp.pad(features, ((0, pad), (0, 0)))
        labels2d = jnp.pad(labels2d, ((0, pad), (0, 0)), constant_values=-1)

    # lane -> class-id map for the [TN, C*D] fused operand (streamed once, tiny).
    lane_cls = jnp.repeat(jnp.arange(c, dtype=jnp.int32), d).reshape(1, c * d)

    m2_cls_major = d >= 128
    m2_shape = (splits, c * d, d) if m2_cls_major else (splits, d, c * d)
    m2_block = (1,) + m2_shape[1:]

    kernel = functools.partial(
        _lda_stats_kernel,
        m2_cls_major=m2_cls_major,
        use_bf16_matmul=bool(use_bf16_matmul) and features.dtype == jnp.float32)

    counts3, sums3, m2_flat3 = pl.pallas_call(
        kernel,
        out_shape=(
            jax.ShapeDtypeStruct((splits, 1, c), jnp.float32),
            jax.ShapeDtypeStruct((splits, c, d), jnp.float32),
            jax.ShapeDtypeStruct(m2_shape, jnp.float32),
        ),
        grid_spec=pltpu.PrefetchScalarGridSpec(
            num_scalar_prefetch=0,
            grid=(splits, per_split_tiles),
            in_specs=[
                pl.BlockSpec((1, c * d), lambda p, i: (0, 0)),                     # lane->class map
                pl.BlockSpec((tile_n, d), lambda p, i: (p * per_split_tiles + i, 0)),  # features
                pl.BlockSpec((tile_n, 1), lambda p, i: (p * per_split_tiles + i, 0)),  # labels
            ],
            out_specs=[
                pl.BlockSpec((1, 1, c), lambda p, i: (p, 0, 0)),
                pl.BlockSpec((1, c, d), lambda p, i: (p, 0, 0)),
                pl.BlockSpec(m2_block, lambda p, i: (p, 0, 0)),
            ],
        ),
        compiler_params=pltpu.CompilerParams(
            dimension_semantics=("parallel", "arbitrary"),   # core-split, N-reduction
            vmem_limit_bytes=int(budget),
        ),
    )(lane_cls, features, labels2d)

    counts = jnp.sum(counts3[:, 0, :], axis=0)                          # [C]
    sums = jnp.sum(sums3, axis=0)                                       # [C, D]
    m2_flat = jnp.sum(m2_flat3, axis=0)
    if m2_cls_major:
        m2 = m2_flat.reshape(c, d, d)                                   # free reshape
    else:
        m2 = m2_flat.reshape(d, c, d).transpose(1, 0, 2)                # [C, D, D]
    return counts, sums, m2


# --------------------------------------------------------------------------- #
# Plain-JAX epilogue: covariances, generalized eig, top-k threshold            #
# --------------------------------------------------------------------------- #
def _finalize_from_stats(counts, sums, m2, r, n_components, epsilon):
    counts = counts.astype(jnp.float32)
    c, d = sums.shape
    n_tot = jnp.sum(counts)

    # Per-class unbiased covariance from (count, sum, second moment).
    mu_c = sums / counts[:, None]                                        # [C, D]
    outer_c = mu_c[:, :, None] * mu_c[:, None, :]                        # [C, D, D]
    sw_stack = (m2 - counts[:, None, None] * outer_c) / (counts[:, None, None] - 1.0)
    sw = jnp.mean(sw_stack, axis=0)                                      # [D, D]

    # Total covariance.
    mu = jnp.sum(sums, axis=0) / n_tot
    st = (jnp.sum(m2, axis=0) - n_tot * jnp.outer(mu, mu)) / (n_tot - 1.0)

    sb = st - sw                          # Sb uses the *unregularized* Sw (as in torch)
    sw = sw + r * jnp.eye(d, dtype=jnp.float32)

    # eigvals(inv(Sw) @ Sb).real  ==  eigvalsh(L^{-1} Sb L^{-T}),  Sw = L L^T.
    chol = jnp.linalg.cholesky(sw)
    a = solve_triangular(chol, sb, lower=True)
    a = solve_triangular(chol, a.T, lower=True)
    evals = jnp.linalg.eigvalsh(a)                                        # ascending

    top = evals[-n_components:]
    thresh = jnp.min(top) + epsilon
    mask = top <= thresh
    # -mean(top[top <= thresh]) as a masked mean (static shapes).
    return -jnp.sum(jnp.where(mask, top, 0.0)) / jnp.sum(mask.astype(jnp.float32))


def deep_lda_loss(features, labels, num_classes, r=0.001, n_components=None,
                  epsilon=1.0, tile_n=None, num_core_splits=2,
                  use_bf16_matmul=False):
    if n_components is None:
        n_components = num_classes - 1
    counts, sums, m2 = _lda_stats_pallas(features, labels, num_classes, tile_n,
                                         num_core_splits, use_bf16_matmul)
    return _finalize_from_stats(counts, sums, m2, r, n_components, epsilon)


# --------------------------------------------------------------------------- #
# Pure-JAX reference (independent centered-covariance formulation)             #
# --------------------------------------------------------------------------- #
def _reference_jax(features, labels, num_classes, r=0.001, n_components=None,
                   epsilon=1.0):
    features = features.astype(jnp.float32)
    n, d = features.shape
    if n_components is None:
        n_components = num_classes - 1
    one_hot = jax.nn.one_hot(labels, num_classes, dtype=jnp.float32)     # [N, C]
    counts = one_hot.sum(0)
    mu_c = (one_hot.T @ features) / counts[:, None]
    xc = features[:, None, :] - mu_c[None, :, :]                         # [N, C, D]
    sw_stack = jnp.einsum('nc,ncd,nce->cde', one_hot, xc, xc) / (counts[:, None, None] - 1.0)
    sw = sw_stack.mean(0)
    xbar = features - features.mean(0)
    st = xbar.T @ xbar / (n - 1.0)
    sb = st - sw
    sw = sw + r * jnp.eye(d, dtype=jnp.float32)
    chol = jnp.linalg.cholesky(sw)
    a = solve_triangular(chol, sb, lower=True)
    a = solve_triangular(chol, a.T, lower=True)
    evals = jnp.linalg.eigvalsh(a)
    top = evals[-n_components:]
    thresh = jnp.min(top) + epsilon
    mask = top <= thresh
    return -jnp.sum(jnp.where(mask, top, 0.0)) / jnp.sum(mask.astype(jnp.float32))


if __name__ == "__main__":
    key = jax.random.PRNGKey(0)
    N, D, NUM_CLASSES = 60, 32, 4     # N not a tile multiple -> exercises label/feature padding

    kf, kp = jax.random.split(key)
    features = jax.random.normal(kf, (N, D), dtype=jnp.float32)
    # Deterministic labels covering every class (15 samples/class, so all per-class
    # covariances are well-defined).
    labels = jax.random.permutation(kp, jnp.arange(N, dtype=jnp.int32) % NUM_CLASSES)

    # tile_n=16 with core_splits=2 -> grid (2, 2): exercises the core-parallel split,
    # the accumulating reduction pipeline, and the padded last tile.
    loss = deep_lda_loss(features, labels, NUM_CLASSES, r=0.001, epsilon=1.0,
                         tile_n=16, num_core_splits=2)
    loss = jax.block_until_ready(loss)

    ref = _reference_jax(features, labels, NUM_CLASSES, r=0.001, epsilon=1.0)
    ref = jax.block_until_ready(ref)

    assert jnp.isfinite(loss), ("loss is not finite", loss)
    assert jnp.allclose(loss, ref, rtol=1e-3, atol=1e-3), (loss, ref)

    print("KERNEL_OK")
</pallas_src>

<mosaic_0001>
module attributes {stable_mosaic.version = 11 : i64} {
  func.func @_lda_stats_kernel(%arg0: i32, %arg1: i32, %arg2: memref<1x128xi32, #tpu.memory_space<vmem>>, %arg3: memref<16x32xf32, #tpu.memory_space<vmem>>, %arg4: memref<16x1xi32, #tpu.memory_space<vmem>>, %arg5: memref<1x1x4xf32, #tpu.memory_space<vmem>>, %arg6: memref<1x4x32xf32, #tpu.memory_space<vmem>>, %arg7: memref<1x32x128xf32, #tpu.memory_space<vmem>>) attributes {dimension_semantics = [#tpu.dimension_semantics<parallel>, #tpu.dimension_semantics<arbitrary>], iteration_bounds = array<i64: 2, 2>, scalar_prefetch = 0 : i64, scratch_operands = 0 : i64, tpu.core_type = #tpu.core_type<tc>, window_params = [{pipeline_mode = #tpu.pipeline_mode<synchronous>, transform_indices = @transform_0, window_bounds = array<i64: 1, 128>}, {transform_indices = @transform_1, window_bounds = array<i64: 16, 32>}, {transform_indices = @transform_2, window_bounds = array<i64: 16, 1>}, {transform_indices = @transform_3, window_bounds = array<i64: 1, 1, 4>}, {transform_indices = @transform_4, window_bounds = array<i64: 1, 4, 32>}, {transform_indices = @transform_5, window_bounds = array<i64: 1, 32, 128>}]} {
    %c0_i32 = arith.constant 0 : i32
    %0 = arith.cmpi eq, %arg1, %c0_i32 : i32
    %1 = arith.extui %0 : i1 to i32
    %c0_i32_0 = arith.constant 0 : i32
    %2 = arith.cmpi ne, %1, %c0_i32_0 : i32
    scf.if %2 {
      %cst_27 = arith.constant 0.000000e+00 : f32
      %35 = vector.broadcast %cst_27 : f32 to vector<1x1x4xf32>
      %c0_28 = arith.constant 0 : index
      %c0_29 = arith.constant 0 : index
      %c0_30 = arith.constant 0 : index
      %36 = vector.load %arg5[%c0_28, %c0_29, %c0_30] : memref<1x1x4xf32, #tpu.memory_space<vmem>>, vector<1x1x4xf32>
      tpu.vector_store %arg5[%c0_28, %c0_29, %c0_30], %35 {strides = array<i32>} : memref<1x1x4xf32, #tpu.memory_space<vmem>>, vector<1x1x4xf32>,
      %cst_31 = arith.constant 0.000000e+00 : f32
      %37 = vector.broadcast %cst_31 : f32 to vector<1x4x32xf32>
      %c0_32 = arith.constant 0 : index
      %c0_33 = arith.constant 0 : index
      %c0_34 = arith.constant 0 : index
      %38 = vector.load %arg6[%c0_32, %c0_33, %c0_34] : memref<1x4x32xf32, #tpu.memory_space<vmem>>, vector<1x4x32xf32>
      tpu.vector_store %arg6[%c0_32, %c0_33, %c0_34], %37 {strides = array<i32>} : memref<1x4x32xf32, #tpu.memory_space<vmem>>, vector<1x4x32xf32>,
      %cst_35 = arith.constant 0.000000e+00 : f32
      %39 = vector.broadcast %cst_35 : f32 to vector<1x32x128xf32>
      %c0_36 = arith.constant 0 : index
      %c0_37 = arith.constant 0 : index
      %c0_38 = arith.constant 0 : index
      %40 = vector.load %arg7[%c0_36, %c0_37, %c0_38] : memref<1x32x128xf32, #tpu.memory_space<vmem>>, vector<1x32x128xf32>
      tpu.vector_store %arg7[%c0_36, %c0_37, %c0_38], %39 {strides = array<i32>} : memref<1x32x128xf32, #tpu.memory_space<vmem>>, vector<1x32x128xf32>,
    } else {
    }
    %c0 = arith.constant 0 : index
    %c0_1 = arith.constant 0 : index
    %3 = vector.load %arg3[%c0, %c0_1] : memref<16x32xf32, #tpu.memory_space<vmem>>, vector<16x32xf32>
    %c0_2 = arith.constant 0 : index
    %c0_3 = arith.constant 0 : index
    %4 = vector.load %arg4[%c0_2, %c0_3] : memref<16x1xi32, #tpu.memory_space<vmem>>, vector<16x1xi32>
    %5 = tpu.iota {dimensions = array<i32: 1>} : vector<16x4xi32>
    %6 = vector.broadcast %4 : vector<16x1xi32> to vector<16x4xi32>
    %7 = arith.cmpi eq, %5, %6 : vector<16x4xi32>
    %c0_4 = arith.constant 0 : index
    %c0_5 = arith.constant 0 : index
    %c0_6 = arith.constant 0 : index
    %8 = vector.load %arg5[%c0_4, %c0_5, %c0_6] : memref<1x1x4xf32, #tpu.memory_space<vmem>>, vector<1x1x4xf32>
    %9 = arith.extui %7 : vector<16x4xi1> to vector<16x4xi32>
    %10 = arith.sitofp %9 : vector<16x4xi32> to vector<16x4xf32>
    %cst = arith.constant dense<0.000000e+00> : vector<4xf32>
    %11 = vector.multi_reduction <add>, %10, %cst [0] : vector<16x4xf32> to vector<4xf32>
    %12 = vector.shape_cast %11 : vector<4xf32> to vector<1x4xf32>
    %13 = vector.shape_cast %12 : vector<1x4xf32> to vector<1x1x4xf32>
    %14 = arith.addf %8, %13 : vector<1x1x4xf32>
    %c0_7 = arith.constant 0 : index
    %c0_8 = arith.constant 0 : index
    %c0_9 = arith.constant 0 : index
    %15 = vector.load %arg5[%c0_7, %c0_8, %c0_9] : memref<1x1x4xf32, #tpu.memory_space<vmem>>, vector<1x1x4xf32>
    tpu.vector_store %arg5[%c0_7, %c0_8, %c0_9], %14 {strides = array<i32>} : memref<1x1x4xf32, #tpu.memory_space<vmem>>, vector<1x1x4xf32>,
    %c0_10 = arith.constant 0 : index
    %c0_11 = arith.constant 0 : index
    %c0_12 = arith.constant 0 : index
    %16 = vector.load %arg6[%c0_10, %c0_11, %c0_12] : memref<1x4x32xf32, #tpu.memory_space<vmem>>, vector<1x4x32xf32>
    %17 = arith.extui %7 : vector<16x4xi1> to vector<16x4xi32>
    %18 = arith.sitofp %17 : vector<16x4xi32> to vector<16x4xf32>
    %cst_13 = arith.constant dense<0.000000e+00> : vector<4x32xf32>
    %19 = tpu.matmul %18, %3, %cst_13 {dimension_numbers = #tpu.dot_dimension_numbers<[0], [0], [1], [1], [0, 1, 1, 1], [], []>} : vector<16x4xf32>, vector<16x32xf32>, vector<4x32xf32> -> vector<4x32xf32>
    %20 = vector.shape_cast %19 : vector<4x32xf32> to vector<1x4x32xf32>
    %21 = arith.addf %16, %20 : vector<1x4x32xf32>
    %c0_14 = arith.constant 0 : index
    %c0_15 = arith.constant 0 : index
    %c0_16 = arith.constant 0 : index
    %22 = vector.load %arg6[%c0_14, %c0_15, %c0_16] : memref<1x4x32xf32, #tpu.memory_space<vmem>>, vector<1x4x32xf32>
    tpu.vector_store %arg6[%c0_14, %c0_15, %c0_16], %21 {strides = array<i32>} : memref<1x4x32xf32, #tpu.memory_space<vmem>>, vector<1x4x32xf32>,
    %c0_17 = arith.constant 0 : index
    %c0_18 = arith.constant 0 : index
    %23 = vector.load %arg2[%c0_17, %c0_18] : memref<1x128xi32, #tpu.memory_space<vmem>>, vector<1x128xi32>
    %24 = vector.broadcast %23 : vector<1x128xi32> to vector<16x128xi32>
    %25 = vector.broadcast %4 : vector<16x1xi32> to vector<16x128xi32>
    %26 = arith.cmpi eq, %24, %25 : vector<16x128xi32>
    %27 = tpu.concatenate %3, %3, %3, %3 in 1 : vector<16x32xf32>, vector<16x32xf32>, vector<16x32xf32>, vector<16x32xf32> -> vector<16x128xf32>
    %cst_19 = arith.constant 0.000000e+00 : f32
    %28 = vector.broadcast %cst_19 : f32 to vector<16x128xf32>
    %29 = arith.select %26, %27, %28 : vector<16x128xi1>, vector<16x128xf32>
    %c0_20 = arith.constant 0 : index
    %c0_21 = arith.constant 0 : index
    %c0_22 = arith.constant 0 : index
    %30 = vector.load %arg7[%c0_20, %c0_21, %c0_22] : memref<1x32x128xf32, #tpu.memory_space<vmem>>, vector<1x32x128xf32>
    %cst_23 = arith.constant dense<0.000000e+00> : vector<32x128xf32>
    %31 = tpu.matmul %3, %29, %cst_23 {dimension_numbers = #tpu.dot_dimension_numbers<[0], [0], [1], [1], [0, 1, 1, 1], [], []>} : vector<16x32xf32>, vector<16x128xf32>, vector<32x128xf32> -> vector<32x128xf32>
    %32 = vector.shape_cast %31 : vector<32x128xf32> to vector<1x32x128xf32>
    %33 = arith.addf %30, %32 : vector<1x32x128xf32>
    %c0_24 = arith.constant 0 : index
    %c0_25 = arith.constant 0 : index
    %c0_26 = arith.constant 0 : index
    %34 = vector.load %arg7[%c0_24, %c0_25, %c0_26] : memref<1x32x128xf32, #tpu.memory_space<vmem>>, vector<1x32x128xf32>
    tpu.vector_store %arg7[%c0_24, %c0_25, %c0_26], %33 {strides = array<i32>} : memref<1x32x128xf32, #tpu.memory_space<vmem>>, vector<1x32x128xf32>,
    return
  }
  func.func @transform_0(%arg0: i32, %arg1: i32) -> (i32, i32) {
    %c0_i32 = arith.constant 0 : i32
    %c0_i32_0 = arith.constant 0 : i32
    %c0_i32_1 = arith.constant 0 : i32
    return %c0_i32, %c0_i32_0 : i32, i32
  }
  func.func @transform_1(%arg0: i32, %arg1: i32) -> (i32, i32) {
    %c2_i32 = arith.constant 2 : i32
    %0 = arith.muli %arg0, %c2_i32 : i32
    %1 = arith.addi %0, %arg1 : i32
    %c0_i32 = arith.constant 0 : i32
    %c0_i32_0 = arith.constant 0 : i32
    return %1, %c0_i32 : i32, i32
  }
  func.func @transform_2(%arg0: i32, %arg1: i32) -> (i32, i32) {
    %c2_i32 = arith.constant 2 : i32
    %0 = arith.muli %arg0, %c2_i32 : i32
    %1 = arith.addi %0, %arg1 : i32
    %c0_i32 = arith.constant 0 : i32
    %c0_i32_0 = arith.constant 0 : i32
    return %1, %c0_i32 : i32, i32
  }
  func.func @transform_3(%arg0: i32, %arg1: i32) -> (i32, i32, i32) {
    %c0_i32 = arith.constant 0 : i32
    %c0_i32_0 = arith.constant 0 : i32
    %c0_i32_1 = arith.constant 0 : i32
    return %arg0, %c0_i32, %c0_i32_0 : i32, i32, i32
  }
  func.func @transform_4(%arg0: i32, %arg1: i32) -> (i32, i32, i32) {
    %c0_i32 = arith.constant 0 : i32
    %c0_i32_0 = arith.constant 0 : i32
    %c0_i32_1 = arith.constant 0 : i32
    return %arg0, %c0_i32, %c0_i32_0 : i32, i32, i32
  }
  func.func @transform_5(%arg0: i32, %arg1: i32) -> (i32, i32, i32) {
    %c0_i32 = arith.constant 0 : i32
    %c0_i32_0 = arith.constant 0 : i32
    %c0_i32_1 = arith.constant 0 : i32
    return %arg0, %c0_i32, %c0_i32_0 : i32, i32, i32
  }
}

</mosaic_0001>

<bundles_post_ra>
// kernel: tpu_custom_call.1
= control target key start
LH: loop header
LB: loop body
LE: loop exit
PB: predicated region body
PF: predicated region fallthrough
CT: control target
= control target key end

     0   :  { %11 = vsyncpa [#allocation3], 0  ;;  %s1410_s0 = inlined_call_operand.vmem [shape: s32[1,128], index: 0, kind: input, shape index: {}]   ;;  %s1411_s1 = inlined_call_operand.vmem [shape: f32[64,32], index: 1, kind: input, shape index: {}]   ;;  %s1412_s2 = inlined_call_operand.vmem [shape: s32[64,1], index: 2, kind: input, shape index: {}]   ;;  %s1413_s3 = inlined_call_operand.hbm [shape: f32[2,1,4], index: 3, kind: output, shape index: {0}]   ;;  %s1414_s4 = inlined_call_operand.hbm [shape: f32[2,4,32], index: 4, kind: output, shape index: {1}]   ;;  %s1415_s5 = inlined_call_operand.hbm [shape: f32[2,32,128], index: 5, kind: output, shape index: {2}]  }
   0x1   :  { %13 = vsyncpa [#allocation3 + $0x1], 0 }
   0x2   :  { %14 = vsyncpa [#allocation5], 0 }
   0x3   :  { %16 = vsyncpa [#allocation5 + $0x1], 0  ;;  %s1174_s18 = smov 0   ;;  %s1176_s19 = smov 0  }
   0x4   :  { %s1178_s20 = smov 0   ;;  %s1180_s21 = smov 0  }
   0x5   :  { %s1182_s22 = smov 0   ;;  %s1184_s23 = smov 0  }
   0x6   :  { %s1186_s24 = smov 0   ;;  %s1188_s25 = smov 0  }
   0x7 LB: > { %1421 = sst [smem:[#allocation9_spill]] %s1122_s23  ;;  %s1417_s26 = sadd.s32 4294967295, %s1130_s25   ;;  %s1130_s25 = sphi %s1188_s25, %s22_s25   ;;  %s1126_s24 = sphi %s1186_s24, %s1432_s24   ;;  %s1122_s23 = sphi %s1184_s23, %s1431_s23   ;;  %s1118_s22 = sphi %s1182_s22, %s1430_s22   ;;  %s1114_s21 = sphi %s1180_s21, %s1429_s21   ;;  %s1110_s20 = sphi %s1178_s20, %s1435_s20   ;;  %s1106_s19 = sphi %s1176_s19, %s1434_s19   ;;  %s1102_s18 = sphi %s1174_s18, %s1433_s18  }
   0x8   : > { %1422 = sst [smem:[#allocation10_spill]] %s1126_s24  ;;  %s1416_s27 = sadd.s32 4294967294, %s1130_s25  }
   0x9   : > { %s31_s28 = sadd.s32 1, %s1122_s23  ;;  %s34_s29 = sadd.s32 1, %s1126_s24 }
   0xa   : > { %p32_p0 = scmp.ge.s32.totalorder %s31_s28, 2  ;;  %p132_p1 = scmp.ne.s32.totalorder %s1110_s20, %s1106_s19 }
   0xb   : > { %p133_p2 = scmp.eq.s32.totalorder %s1417_s26, 3  ;;  %p138_p4 = scmp.ne.s32.totalorder %s1106_s19, %s1102_s18 }
   0xc   : > { %s1437_s28 = smov (%p32_p0, %s31_s28), 0  ;;  %s1439_s29 = smov (!%p32_p0, %s34_s29), %s1126_s24 }
   0xd   : > { %1423 = sst [smem:[#allocation11_spill]] %s1437_s28  ;;  %p1225_p3 = por %p133_p2, %p132_p1 }
   0xe   : > { %p36_p5 = scmp.ge.s32.totalorder %s1439_s29, 2  ;;  %p139_p6 = scmp.eq.s32.totalorder %s1416_s27, 3 }
   0xf   : > { %p836_p7 = scmp.ge.s32.totalorder %s1130_s25, 1  ;;  %p238_p8 = scmp.lt.s32.totalorder %s1130_s25, 5 }
  0x10   : > { %s1441_s29 = smov (%p36_p5, %s1439_s29), 0  ;;  %p1237_p9 = por %p139_p6, %p138_p4 }
  0x11   : > { %1425 = sst [smem:[#allocation12_spill]] %s1441_s29  ;;  %p239_p10 = pnand %p836_p7, %p238_p8 }
  0x12   : > { %s119_s7 = ssub.s32 %s1126_s24, %s1441_s29  ;;  %s122_s8 = sadd.s32 1, %s1110_s20 }
  0x13   : > { %p120_p11 = scmp.eq.s32.totalorder %s119_s7, 0  ;;  %242 = sbr.rel (%p239_p10) target bundleno = 520 (0x208), region = 32 }
  0x14   : > { %s1248_s10 = sand.u32 (!%p239_p10), 1, %s1106_s19   ;;  %s839_s11 = sshll.u32 (!%p239_p10), %s1118_s22, 1 }
  0x15   : > { %s1245_s9 = scalar_select %p120_p11, %s1110_s20, %s122_s8  }
  0x16   : > { %s837_s12 = sshll.u32 (!%p239_p10), %s1248_s10, 2  ;;  %s838_s13 = sshll.u32 (!%p239_p10), %s1248_s10, 5 }
  0x17   : > { %s285_s14 = sadd.s32 (!%p239_p10), %s1114_s21, %s839_s11  ;;  %s1261_s28 = scalar_lea.vmem (!%p239_p10), [#allocation2], %s1248_s10 }
  0x18   : > { %s840_s15 = sshll.u32 %s285_s14, 1  ;;  %s1263_s24 = scalar_lea.vmem [#allocation4], %s837_s12 }
  0x19   : > { %p287_p12 = scmp.lt.s32.totalorder %s840_s15, 7  ;;  %s1265_s23 = scalar_lea.vmem [#allocation6], %s838_s13 }
  0x1a   : > { %p845_p13 = scmp.ne.s32.totalorder %s1114_s21, 0 }
  0x1b   : > { %s1443_s15 = smov (!%p287_p12, %s840_s15), 7 }
  0x1c   : > { %s841_s16 = sshll.u32 %s1443_s15, 3  ;;  %307 = sbr.rel (%p845_p13) target bundleno = 37 (0x25), region = 36 }
  0x1d   : > { %s290_s8 = scalar_lea.vmem %s1411_s1, %s841_s16  ;;  %s300_s29 = scalar_lea.vmem %s1412_s2, %s841_s16 }
  0x21   : > { %vm308_vm0 = vcmask 24576   ;;  %vm310_vm1 = vcmask 257024   ;;  %v1132_v0 = vmov 0.0  }
  0x22   : > { %309 = vst.msk [vmem:[%s1261_s28] sm:$0x1] %vm308_vm0, %v1132_v0  ;;  %312 = vst [vmem:[%s1265_s23] sm:$0xff] %v1132_v0 }
  0x23   : > { %313 = vst [vmem:[%s1265_s23 + $0x8] sm:$0xff] %v1132_v0  ;;  %314 = vst [vmem:[%s1265_s23 + $0x10] sm:$0xff] %v1132_v0 }
  0x24   : > { %315 = vst [vmem:[%s1265_s23 + $0x18] sm:$0xff] %v1132_v0  ;;  %311 = vst.msk [vmem:[%s1263_s24] sm:$0xf] %vm310_vm1, %v1132_v0 }
  0x25 PF: > { %v318_v1 = vld [vmem:[%s300_s29] sm:$0xff]  ;;  %v317_v2 = vld [vmem:[%s290_s8 + $0x8] sm:$0xff]  ;;  %v1133_v3 = vmov 0   ;;  %s1134_s21 = smov 32   ;;  %v1135_v4 = vmov 0.0   ;;  %s1136_s26 = smov 64   ;;  %v320_v8 = vlaneseq }
  0x26   : > { %981 = vset.pattern.permute.xlu0 %v1133_v3  ;;  %469 = vrot.lane.b32.xlu1 %v317_v2, %s1134_s21  ;;  %v319_v5 = vld [vmem:[%s300_s29 + $0x8] sm:$0xff]  ;;  %v316_v6 = vld [vmem:[%s290_s8] sm:$0xff]  ;;  %s1137_s27 = smov 96   ;;  %vm1138_vm2 = vmmov 0   ;;  %vm485_vm3 = vcmask 261120   ;;  %vm488_vm4 = vcmask 523264  }
  0x27   : > { %323 = vperm.xlu0 %981, %v318_v1   ;;  %874 = vmatprep.subr.mxu0 %v1135_v4  ;;  %v321_v11 = vand.u32 127, %v320_v8  ;;  %vm491_vm5 = vcmask 785408   ;;  %vm335_vm7 = vcmask 31744   ;;  %v849_v18 = vld [vmem:[%s1410_s0] ss:$0 sm:$0xff]  ;;  %vm346_vm11 = vcmask 24576  }
  0x28   : > { %875 = vmatpush3.msra.mxu0 %v317_v2  ;;  %878 = vmatprep.mubr.msk.f32.mxu0 %vm1138_vm2, %v1135_v4  ;;  %vm381_vm12 = vcmask 130048   ;;  %s858_s12 = sshll.u32 %s1118_s22, 4  ;;  %s660_s16 = sshll.u32 %s1261_s28, 4  ;;  %s661_s16 = int_to_ptr.vmem [resolvable:$true] %s660_s16 }
  0x29   : > { %876 = vmatprep.subr.mxu0 %v1135_v4  ;;  %v330_v34 = vld [vmem:[%s1261_s28] sm:$0x1]  ;;  %s658_s15 = scalar_lea.hbm %s1413_s3, %s858_s12  ;;  %s638_s17 = scalar_lea.sflag [#allocation3], %s1248_s10 }
  0x2a   : > { %475 = vrot.lane.b32.xlu1 %v317_v2, %s1136_s26  ;;  %877 = vmatpush3.msra.mxu0 %v316_v6  ;;  %s982_s7 = scalar_lea.vmem %s661_s16, 16  ;;  %s1139_s8 = smov [#allocation2]  }
  0x2b   : > { %326 = vperm.xlu0 %981, %v319_v5   ;;  %p983_p0 = scmp.ne.s32.totalorder %s661_s16, %s982_s7 }
  0x2d   : > { %p984_p1 = pnand %p983_p0, %p1225_p3 }
  0x2e   : > { %481 = vrot.lane.b32.xlu1 %v317_v2, %s1137_s27 }
  0x2f   : > { %467 = vrot.lane.b32.xlu0 %v316_v6, %s1134_s21  ;;  %p985_p2 = pneg %p984_p1  ;;  %s986_s21 = sshll.u32 %s1139_s8, 4  ;;  %s987_s21 = int_to_ptr.vmem [resolvable:$false] %s986_s21 }
  0x30   : > { %p989_p4 = scmp.lt.s32.totalorder %s661_s16, %s987_s21 }
  0x32   : > { %479 = vrot.lane.b32.xlu1 %v316_v6, %s1137_s27 }
  0x33   : > { %473 = vrot.lane.b32.xlu0 %v316_v6, %s1136_s26  ;;  %s988_s26 = scalar_lea.vmem %s987_s21, 32 }
  0x34   : > { %p990_p5 = scmp.lt.s32.totalorder %s988_s26, %s982_s7 }
  0x36   : > { %p991_p6 = por %p990_p5, %p989_p4 }
  0x38   : > { %p992_p7 = pnand %p991_p6, %p985_p2 }
  0x51   : > { %500 = vxpose.xlu0.b32.start [1/2] (short) (narrow) %v316_v6, 32 }
  0x55   : > { %501 = vxpose.xlu0.b32.end [2/2] (short) (narrow) %v317_v2, 32 }
  0x98   : > { %v470_v7 = vpop.permute.xlu1 %469 }
  0x99   : > { %v487_v10 = vsel %vm485_vm3, %v317_v2, %v470_v7 }
  0x9c   : > { %v476_v9 = vpop.permute.xlu1 %475 }
  0x9d   : > { %v490_v13 = vsel %vm488_vm4, %v487_v10, %v476_v9 }
  0xa0   : > { %v482_v14 = vpop.permute.xlu1 %481 }
  0xa1   : > { %v493_v16 = vsel %vm491_vm5, %v490_v13, %v482_v14 }
  0xa2   : > { %v324_v12 = vpop.permute.xlu0 %323 }
  0xa3   : > { %vm328_vm6 = vcmp.eq.s32.totalorder %v321_v11, %v324_v12  ;;  %vm463_vm10 = vcmp.eq.s32.totalorder %v849_v18, %v324_v12 }
  0xa4   : > { %v846_v15 = vsel %vm328_vm6, 1.0, %v1135_v4  ;;  %v480_v26 = vpop.permute.xlu1 %479 }
  0xa5   : > { %349 = vxpose.xlu1.b32.start [1/2] (short) (narrow) %v846_v15, 8  ;;  %v336_v20 = vsel %vm335_vm7, %v846_v15, 0.0 }
  0xa6   : > { %v327_v17 = vpop.permute.xlu0 %326 }
  0xa7   : > { %vm329_vm8 = vcmp.eq.s32.totalorder %v321_v11, %v327_v17  ;;  %vm464_vm9 = vcmp.eq.s32.totalorder %v849_v18, %v327_v17 }
  0xa8   : > { %881 = vmatprep.subr.msk.mxu1 %vm464_vm9, %v493_v16  ;;  %v847_v19 = vsel %vm329_vm8, 1.0, %v1135_v4 }
  0xa9   : > { %882 = vmatpush3.msk.msra.mxu1 %vm464_vm9, %v493_v16  ;;  %v337_v21 = vsel %vm335_vm7, %v847_v19, 0.0  ;;  %350 = vxpose.xlu1.b32.end [2/2] (short) (narrow) %v847_v19, 8 }
  0xaa   : > { %v338_v22 = vadd.f32 %v337_v21, %v336_v20  ;;  %v468_v23 = vpop.permute.xlu0 %467 }
  0xab   : > { %v486_v25 = vsel %vm485_vm3, %v316_v6, %v468_v23 }
  0xac   : > { %v339_v24 = vrot.slane %v338_v22, 4 }
  0xae   : > { %v340_v27 = vadd.f32 %v339_v24, %v338_v22  ;;  %v474_v28 = vpop.permute.xlu0 %473 }
  0xaf   : > { %v489_v29 = vsel %vm488_vm4, %v486_v25, %v474_v28 }
  0xb0   : > { %v341_v30 = vrot.slane %v340_v27, 2  ;;  %v492_v31 = vsel %vm491_vm5, %v489_v29, %v480_v26 }
  0xb1   : > { %883 = vmatprep.subr.msk.mxu1 %vm463_vm10, %v492_v31 }
  0xb2   : > { %v342_v32 = vadd.f32 %v341_v30, %v340_v27  ;;  %884 = vmatpush3.msk.msra.mxu1 %vm463_vm10, %v492_v31 }
  0xb4   : > { %v343_v33 = vrot.slane %v342_v32, 1 }
  0xb6   : > { %v344_v35 = vadd.f32 %v343_v33, %v342_v32 }
  0xb8   : > { %v345_v36 = vadd.f32 %v344_v35, %v330_v34 }
  0xba   : > { %347 = vst.msk [vmem:[%s1261_s28] sm:$0x1] %vm346_vm11, %v345_v36 }
  0xcd   : > { %v516_v37 = vpop.trf.xlu0 }
  0xce   : > { %885 = vmatprep.mubr.msk.f32.mxu1 %vm381_vm12, %v516_v37 }
  0xd1   : > { %v517_v38 = vpop.trf.xlu0 }
  0xd2   : > { %886 = vmatmul.mubr.msk.f32.vlgmr.msra.gmra.mxu1 %vm381_vm12, %v517_v38 }
  0xd5   : > { %v518_v39 = vpop.trf.xlu0 }
  0xd6   : > { %888 = vmatprep.mubr.msk.f32.mxu1 %vm381_vm12, %v518_v39 }
  0xd9   : > { %v519_v40 = vpop.trf.xlu0 }
  0xda   : > { %889 = vmatmul.mubr.msk.f32.gmra.mxu1 %vm381_vm12, %v519_v40 }
 0x121   : > { %v365_v41 = vpop.trf.xlu1 }
 0x122   : > { %879 = vmatmul.mubr.msk.f32.vlgmr.msra.gmra.mxu0 %vm381_vm12, %v365_v41 }
 0x123   : > { %995 = shalt.err (!%p992_p7)
}
 0x124   : > { %s996_s27 = scalar_lea.hbm %s658_s15, 16  ;;  %s1000_s29 = scalar_lea.hbm %s1413_s3, 32 }
 0x125   : > { %p997_p8 = scmp.ne.s32.totalorder %s658_s15, %s996_s27  ;;  %p1001_p12 = scmp.lt.s32.totalorder %s658_s15, %s1413_s3 }
 0x126   : > { %p1002_p13 = scmp.lt.s32.totalorder %s1000_s29, %s996_s27 }
 0x127   : > { %p998_p10 = pnand %p997_p8, %p1225_p3 }
 0x128   : > { %p1003_p0 = por %p1002_p13, %p1001_p12 }
 0x129   : > { %p999_p11 = pneg %p998_p10 }
 0x12b   : > { %p1004_p1 = pnand %p1003_p0, %p999_p11 }
 0x12d   : > { %1007 = shalt.err (!%p1004_p1)
}
 0x12e   : > { %891 = dma.vmem_to_hbm [thread:$0]  (%p1225_p3), %s661_s16, 16, %s658_s15, %s638_s17   ;;  %v497_v42 = vld [vmem:[%s1265_s23 + $0x8] sm:$0xff]  ;;  %v496_v44 = vld [vmem:[%s1265_s23] sm:$0xff]  ;;  %v499_v48 = vld [vmem:[%s1265_s23 + $0x18] sm:$0xff]  ;;  %vm456_vm13 = vcmask 257024  }
 0x12f   : > { %v498_v50 = vld [vmem:[%s1265_s23 + $0x10] sm:$0xff]  ;;  %s1427_s13 = sadd.s32 4294967295, %s1130_s25   ;;  %s859_s15 = sshll.u32 %s1118_s22, 6  ;;  %v348_v54 = vld [vmem:[%s1263_s24] sm:$0xf] }
 0x130   : > { %s1313_s14 = sand.u32 1, %s1427_s13   ;;  %s673_s16 = sshll.u32 %s1263_s24, 4  ;;  %s1325_s16 = int_to_ptr.vmem [resolvable:$true] %s673_s16 }
 0x131   : > { %s864_s17 = sshll.u32 %s1118_s22, 9  ;;  %s686_s7 = sshll.u32 %s1265_s23, 4  ;;  %s1332_s7 = int_to_ptr.vmem [resolvable:$true] %s686_s7 }
 0x132   : > { %s1323_s26 = scalar_lea.hbm %s1414_s4, %s859_s15  ;;  %s1330_s10 = scalar_lea.hbm %s1415_s5, %s864_s17 }
 0x133   : > { %s642_s22 = scalar_lea.sflag [#allocation5], %s1313_s14  ;;  %s1140_s29 = smov [#allocation4]  }
 0x134   : > { %s1012_s11 = sshll.u32 %s1140_s29, 4  ;;  %s1013_s11 = int_to_ptr.vmem [resolvable:$false] %s1012_s11 }
 0x135   : > { %s1014_s12 = scalar_lea.vmem %s1013_s11, 128  ;;  %p1015_p6 = scmp.lt.s32.totalorder %s1325_s16, %s1013_s11 }
 0x192   : > { %v887_v43 = vpop.f32.mrf.mxu1 }
 0x193   : > { %v630_v45 = vadd.f32 %v887_v43, %v497_v42 }
 0x194   : > { %v610_v46 = vpop.f32.mrf.mxu1 }
 0x195   : > { %634 = vst [vmem:[%s1265_s23 + $0x8] sm:$0xff] %v630_v45  ;;  %v629_v47 = vadd.f32 %v610_v46, %v496_v44 }
 0x197   : > { %633 = vst [vmem:[%s1265_s23] sm:$0xff] %v629_v47 }
 0x19a   : > { %v890_v49 = vpop.f32.mrf.mxu1 }
 0x19b   : > { %v632_v51 = vadd.f32 %v890_v49, %v499_v48 }
 0x19c   : > { %v620_v52 = vpop.f32.mrf.mxu1 }
 0x19d   : > { %636 = vst [vmem:[%s1265_s23 + $0x18] sm:$0xff] %v632_v51  ;;  %v631_v53 = vadd.f32 %v620_v52, %v498_v50 }
 0x19f   : > { %635 = vst [vmem:[%s1265_s23 + $0x10] sm:$0xff] %v631_v53  ;;  %s1008_s23 = scalar_lea.vmem %s1325_s16, 64 }
 0x1a0   : > { %p1009_p2 = scmp.ne.s32.totalorder %s1325_s16, %s1008_s23  ;;  %p1016_p7 = scmp.lt.s32.totalorder %s1014_s12, %s1008_s23 }
 0x1a2   : > { %p1010_p4 = pnand %p1009_p2, %p1225_p3  ;;  %p1017_p8 = por %p1016_p7, %p1015_p6 }
 0x1a4   : > { %p1011_p5 = pneg %p1010_p4 }
 0x1a6   : > { %p1018_p10 = pnand %p1017_p8, %p1011_p5 }
 0x1e2   : > { %v451_v55 = vpop.f32.mrf.mxu0 }
 0x1e3   : > { %v455_v56 = vadd.f32 %v451_v55, %v348_v54 }
 0x1e4   : > { %v880_v57 = vpop.f32.mrf.mxu0 }
 0x1e5   : > { %457 = vst.msk [vmem:[%s1263_s24] sm:$0xf] %vm456_vm13, %v455_v56 }
 0x1e6   : > { %1021 = shalt.err (!%p1018_p10)
}
 0x1e7   : > { %s1022_s24 = scalar_lea.hbm %s1323_s26, 64  ;;  %s1026_s17 = scalar_lea.hbm %s1414_s4, 128 }
 0x1e8   : > { %p1023_p11 = scmp.ne.s32.totalorder %s1323_s26, %s1022_s24  ;;  %p1027_p0 = scmp.lt.s32.totalorder %s1323_s26, %s1414_s4 }
 0x1e9   : > { %p1028_p1 = scmp.lt.s32.totalorder %s1026_s17, %s1022_s24 }
 0x1ea   : > { %p1024_p12 = pnand %p1023_p11, %p1225_p3 }
 0x1eb   : > { %p1029_p2 = por %p1028_p1, %p1027_p0 }
 0x1ec   : > { %p1025_p13 = pneg %p1024_p12 }
 0x1ee   : > { %p1030_p4 = pnand %p1029_p2, %p1025_p13 }
 0x1f0   : > { %1033 = shalt.err (!%p1030_p4)
}
 0x1f1   : > { %892 = dma.vmem_to_hbm [thread:$0]  (%p1225_p3), %s1325_s16, 64, %s1323_s26, %s642_s22  }
 0x1f2   : > { %s1034_s27 = scalar_lea.vmem %s1332_s7, 512  ;;  %s1141_s28 = smov [#allocation6]  }
 0x1f3   : > { %p1035_p5 = scmp.ne.s32.totalorder %s1332_s7, %s1034_s27  ;;  %s1038_s23 = sshll.u32 %s1141_s28, 4  ;;  %s1039_s23 = int_to_ptr.vmem [resolvable:$false] %s1038_s23 }
 0x1f4   : > { %s1040_s29 = scalar_lea.vmem %s1039_s23, 1024  ;;  %p1041_p8 = scmp.lt.s32.totalorder %s1332_s7, %s1039_s23 }
 0x1f5   : > { %p1036_p6 = pnand %p1035_p5, %p1225_p3  ;;  %p1042_p10 = scmp.lt.s32.totalorder %s1040_s29, %s1034_s27 }
 0x1f7   : > { %p1037_p7 = pneg %p1036_p6  ;;  %p1043_p11 = por %p1042_p10, %p1041_p8 }
 0x1f9   : > { %p1044_p12 = pnand %p1043_p11, %p1037_p7 }
 0x1fb   : > { %1047 = shalt.err (!%p1044_p12)
}
 0x1fc   : > { %s1048_s11 = scalar_lea.hbm %s1330_s10, 512  ;;  %s1052_s12 = scalar_lea.hbm %s1415_s5, 1024 }
 0x1fd   : > { %p1049_p13 = scmp.ne.s32.totalorder %s1330_s10, %s1048_s11  ;;  %p1053_p2 = scmp.lt.s32.totalorder %s1330_s10, %s1415_s5 }
 0x1fe   : > { %p1054_p4 = scmp.lt.s32.totalorder %s1052_s12, %s1048_s11 }
 0x1ff   : > { %p1050_p0 = pnand %p1049_p13, %p1225_p3 }
 0x200   : > { %p1055_p5 = por %p1054_p4, %p1053_p2 }
 0x201   : > { %p1051_p1 = pneg %p1050_p0 }
 0x203   : > { %p1056_p6 = pnand %p1055_p5, %p1051_p1 }
 0x205   : > { %1059 = shalt.err (!%p1056_p6)
}
 0x206   : > { %s1142_s15 = smov 128   ;;  %s1143_s17 = smov 8  }
 0x207   : > { %893 = dma.vmem_to_hbm [thread:$0]  (%p1225_p3), %s1332_s7, 512, %s1330_s10, %s642_s22, %s1142_s15, %s1142_s15, %s1143_s17  }
 0x208 PF: > { %p907_p7 = scmp.ge.s32.totalorder %s1130_s25, 2  ;;  %s701_s8 = sand.u32 1, %s1102_s18  }
 0x209   : > { %s702_s21 = scalar_lea.sflag [#allocation3], %s701_s8 }
 0x20a   : > { %p898_p8 = pnand %p907_p7, %p1237_p9 }
 0x20c   : > { %p899_p10 = pneg %p898_p8 }
 0x20e   : > { %1093 = dma.done.wait (%p899_p10), %s702_s21, 16  }
 0x20f   : > { %1095 = vsyncadd (%p899_p10), %s702_s21, 4294967280  ;;  %s1428_s27 = sadd.s32 4294967294, %s1130_s25  }
 0x210   : > { %s709_s28 = sand.u32 1, %s1428_s27  }
 0x211   : > { %s710_s23 = scalar_lea.sflag [#allocation5], %s709_s28 }
 0x212   : > { %1097 = dma.done.wait (%p899_p10), %s710_s23, 576  }
 0x213   : > { %1099 = vsyncadd (%p899_p10), %s710_s23, 4294966720  ;;  %s22_s25 = sadd.s32 1, %s1130_s25   ;;  %s1429_s21 = sld [smem:[#allocation9_spill]] }
 0x214   : > { %p19_p3 = scmp.ge.s32.totalorder %s22_s25, 6   ;;  %s1430_s22 = sld [smem:[#allocation10_spill]] }
 0x215   : > { %s1431_s23 = sld [smem:[#allocation11_spill]]  ;;  %s1433_s18 = smov %s1106_s19 }
 0x216   : > { %s1432_s24 = sld [smem:[#allocation12_spill]]  ;;  %s1434_s19 = smov %s1110_s20 }
 0x217   : > { %s1435_s20 = smov %s1245_s9  ;;  %21 = sbr.rel (!%p19_p3) target bundleno = 7 (0x7), region = 106 }
 0x21c   :  { %724 = vsyncpa [#allocation3], 1 }
 0x21d   :  { %726 = vsyncpa [#allocation3 + $0x1], 1 }
 0x21e   :  { %727 = vsyncpa [#allocation5], 1 }
 0x21f   :  { %729 = vsyncpa [#allocation5 + $0x1], 1 }

</bundles_post_ra>
